<compile_context>
chip_gen: v5e
topology: v5e:2x2
jax: 0.10.0
libtpu: 0.0.40
codegen_flags: <defaults>
</compile_context>

<pallas_src>
import jax
import jax.numpy as jnp
from jax.experimental import pallas as pl
from jax.experimental.pallas import tpu as pltpu

LANES = 128
_ROW_ALIGN = 32                 # rows multiple of 32: native packing for every dtype
_FLAT_ALIGN = _ROW_ALIGN * LANES
_SMALL_BYTES = 1 << 20          # <= 1 MiB (max of in/out bytes): single block, no grid
_FLAT_CHUNK_CAP = 256 * 1024    # ragged 1-D fallback keeps modest chunks (sublane-sparse layout)


def _ste_kernel(x_ref, o_ref):
    # Elementwise hot path: hard threshold on the VPU, emit float32 mask.
    o_ref[...] = (x_ref[...] > 0.0).astype(jnp.float32)


def _round_up(a, b):
    return ((a + b - 1) // b) * b


def _tpu_hw():
    """(vmem_bytes_per_core, tensorcores_per_chip) with safe fallbacks."""
    vmem = 64 << 20   # conservative: v7x has 64 MiB per TensorCore
    cores = 1
    try:
        info = pltpu.get_tpu_info()
        vmem = int(getattr(info, "vmem_capacity_bytes", vmem)) or vmem
        for attr in ("num_cores", "tensorcores_per_chip", "core_count", "num_tensorcores"):
            c = getattr(info, attr, None)
            if c:
                cores = max(1, int(c))
                break
    except Exception:
        pass
    if cores == 1:
        try:
            kind = jax.devices()[0].device_kind.lower()
            if any(tag in kind for tag in ("v4", "v5p", "v7", "7x")):
                cores = 2
        except Exception:
            pass
    return vmem, cores


def ste_forward(x, *, tile_rows=8192, donate_input=False):
    """Pallas TPU implementation of STEFunction.forward: (x > 0).float()."""
    orig_shape = x.shape
    n = int(x.size)
    if n == 0:
        return jnp.zeros(orig_shape, dtype=jnp.float32)

    itemsize = jnp.dtype(x.dtype).itemsize
    cost = pl.CostEstimate(flops=n, transcendentals=0,
                           bytes_accessed=n * (itemsize + 4))

    lane_dense = (n % LANES == 0)
    # Free contiguous reshape to a lane-dense slab (or flat vector if ragged).
    xs = x.reshape(n // LANES, LANES) if lane_dense else x.reshape(n)

    # ---- tiny inputs: one lane-dense block, no grid --------------------------
    if n * max(itemsize, 4) <= _SMALL_BYTES:
        out = pl.pallas_call(
            _ste_kernel,
            out_shape=jax.ShapeDtypeStruct(xs.shape, jnp.float32),
            cost_estimate=cost,
        )(xs)
        return out.reshape(orig_shape)

    vmem_cap, cores = _tpu_hw()
    alias = {0: 0} if (donate_input and x.dtype == jnp.float32) else {}

    if lane_dense:
        rows = xs.shape[0]
        # Per-row bytes when double-buffered (in + f32 out).
        per_row_db = 2 * LANES * (itemsize + 4)
        max_rows = max(_ROW_ALIGN,
                       ((vmem_cap // 2) // per_row_db) // _ROW_ALIGN * _ROW_ALIGN)
        tr = min(tile_rows, max_rows, _round_up(rows, _ROW_ALIGN))
        tr = max(_ROW_ALIGN, (tr // _ROW_ALIGN) * _ROW_ALIGN)
        # Only force a split on multi-TensorCore chips: >= 2 blocks per core so
        # each core keeps its DMA/compute pipeline full and stays balanced.
        if cores >= 2 and rows >= 2 * cores * _ROW_ALIGN:
            cap = _round_up(pl.cdiv(rows, 2 * cores), _ROW_ALIGN)
            tr = max(_ROW_ALIGN, min(tr, cap))
            steps = pl.cdiv(rows, tr)
            if steps % cores:
                tr = max(_ROW_ALIGN,
                         _round_up(pl.cdiv(rows, _round_up(steps, cores)), _ROW_ALIGN))
        grid = (pl.cdiv(rows, tr),)
        block = (tr, LANES)
        index_map = lambda i: (i, 0)
        block_elems = tr * LANES
    else:
        # Rare ragged flat length: stream the flat buffer directly; the ragged
        # tail block is handled by Pallas OOB masking (no pad / slice passes).
        max_elems = max(_FLAT_ALIGN,
                        ((vmem_cap // 2) // (2 * (itemsize + 4)))
                        // _FLAT_ALIGN * _FLAT_ALIGN)
        chunk = min(tile_rows * LANES, max_elems, _FLAT_CHUNK_CAP,
                    _round_up(n, _FLAT_ALIGN))
        chunk = max(_FLAT_ALIGN, (chunk // _FLAT_ALIGN) * _FLAT_ALIGN)
        if cores >= 2 and n >= 2 * cores * _FLAT_ALIGN:
            cap = _round_up(pl.cdiv(n, 2 * cores), _FLAT_ALIGN)
            chunk = max(_FLAT_ALIGN, min(chunk, cap))
        grid = (pl.cdiv(n, chunk),)
        block = (chunk,)
        index_map = lambda i: (i,)
        block_elems = chunk

    in_bytes = block_elems * itemsize
    out_bytes = block_elems * 4
    vmem_limit = int(max(16 << 20,
                         min(2 * (in_bytes + out_bytes) + (4 << 20),
                             (vmem_cap * 3) // 4)))

    out = pl.pallas_call(
        _ste_kernel,
        out_shape=jax.ShapeDtypeStruct(xs.shape, jnp.float32),
        grid_spec=pltpu.PrefetchScalarGridSpec(
            num_scalar_prefetch=0,
            grid=grid,
            in_specs=[pl.BlockSpec(block, index_map)],
            out_specs=pl.BlockSpec(block, index_map),
        ),
        compiler_params=pltpu.CompilerParams(
            dimension_semantics=("parallel",),
            vmem_limit_bytes=vmem_limit,
        ),
        cost_estimate=cost,
        input_output_aliases=alias,
    )(xs)
    return out.reshape(orig_shape)


# Straight-through estimator: forward = hard threshold, backward = identity.
@jax.custom_vjp
def ste(x):
    return ste_forward(x)


def _ste_fwd(x):
    return ste_forward(x), x.dtype


def _ste_bwd(in_dtype, g):
    return (g.astype(in_dtype),)


ste.defvjp(_ste_fwd, _ste_bwd)


if __name__ == "__main__":
    key = jax.random.PRNGKey(0)
    k1, k2, k3, k4 = jax.random.split(key, 4)

    # 1) Small NCHW activation (single lane-dense (16,128) block, no grid).
    x_small = jax.random.normal(k1, (2, 4, 16, 16), dtype=jnp.float32)
    # 2) Larger activation exercising the tiled 2-D streaming path.
    x_big = jax.random.normal(k2, (8, 16, 64, 64), dtype=jnp.float32)
    # 3) Flat size NOT a multiple of 128 -> ragged 1-D streaming path (no pad/slice).
    x_ragged = jax.random.normal(k3, (9, 11, 61, 61), dtype=jnp.float32)
    # 4) Narrow dtype, small, lane-dense (checks dtype generality of the kernel).
    x_bf16 = jax.random.normal(k4, (4, 8, 16, 32), dtype=jnp.bfloat16)

    for xi in (x_small, x_big, x_ragged, x_bf16):
        out = jax.block_until_ready(ste_forward(xi))
        ref = (xi > 0.0).astype(jnp.float32)
        assert out.shape == xi.shape, (out.shape, xi.shape)
        assert out.dtype == jnp.float32
        assert bool(jnp.all(out == ref)), "STE kernel mismatch vs reference"

    print("KERNEL_OK")
</pallas_src>

<mosaic_0001>
module attributes {stable_mosaic.version = 11 : i64} {
  func.func @_ste_kernel(%arg0: memref<16x128xf32, #tpu.memory_space<vmem>>, %arg1: memref<16x128xf32, #tpu.memory_space<vmem>>) attributes {dimension_semantics = [], scalar_prefetch = 0 : i64, scratch_operands = 0 : i64, tpu.core_type = #tpu.core_type<tc>} {
    %c0 = arith.constant 0 : index
    %c0_0 = arith.constant 0 : index
    %0 = vector.load %arg0[%c0, %c0_0] : memref<16x128xf32, #tpu.memory_space<vmem>>, vector<16x128xf32>
    %cst = arith.constant 0.000000e+00 : f32
    %1 = vector.broadcast %cst : f32 to vector<16x128xf32>
    %2 = arith.cmpf ogt, %0, %1 : vector<16x128xf32>
    %3 = arith.extui %2 : vector<16x128xi1> to vector<16x128xi32>
    %4 = arith.sitofp %3 : vector<16x128xi32> to vector<16x128xf32>
    %c0_1 = arith.constant 0 : index
    %c0_2 = arith.constant 0 : index
    %5 = vector.load %arg1[%c0_1, %c0_2] : memref<16x128xf32, #tpu.memory_space<vmem>>, vector<16x128xf32>
    tpu.vector_store %arg1[%c0_1, %c0_2], %4 {strides = array<i32>} : memref<16x128xf32, #tpu.memory_space<vmem>>, vector<16x128xf32>,
    return
  }
}

</mosaic_0001>

<bundles_post_ra>
// kernel: tpu_custom_call.1
= control target key start
LH: loop header
LB: loop body
LE: loop exit
PB: predicated region body
PF: predicated region fallthrough
CT: control target
= control target key end

     0   :  { %6 = vsyncpa [#allocation3], 0  ;;  %s134_s0 = inlined_call_operand.hbm [shape: f32[16,128], index: 0, kind: input, shape index: {}]   ;;  %s135_s1 = inlined_call_operand.hbm [shape: f32[16,128], index: 1, kind: output, shape index: {}]  }
   0x1   :  { %7 = vsyncpa [#allocation4], 0  ;;  %s12_s8 = sshll.u32 %s134_s0, 4  ;;  %s113_s9 = smov [#allocation2]   ;;  %s13_s8 = int_to_ptr.hbm [resolvable:$true] %s12_s8 }
   0x2   :  { %s14_s10 = sshll.u32 %s113_s9, 4  ;;  %s114_s11 = smov 128   ;;  %s15_s10 = int_to_ptr.vmem [resolvable:$true] %s14_s10 }
   0x3   :  { %s115_s12 = smov 8  }
   0x4   :  { %20 = dma.hbm_to_vmem [thread:$0]  %s13_s8, 256, %s15_s10, [#allocation3], %s114_s11, %s114_s11, %s115_s12  }
   0x5   :  { %109 = dma.done.wait [#allocation3], 256  }
   0x6   :  { %110 = vsyncadd [#allocation3], 4294967040  ;;  %s116_s13 = smov [#allocation5]   ;;  %s41_s17 = sshll.u32 %s135_s1, 4  ;;  %v25_v0 = vld [vmem:[#allocation2] sm:$0xff]  ;;  %v26_v1 = vld [vmem:[#allocation2 + $0x8] sm:$0xff]  ;;  %s42_s17 = int_to_ptr.hbm [resolvable:$true] %s41_s17 }
   0x7   :  { %s39_s14 = sshll.u32 %s116_s13, 4  ;;  %vm27_vm0 = vcmp.gt.f32.partialorder %v25_v0, 0.0  ;;  %vm28_vm1 = vcmp.gt.f32.partialorder %v26_v1, 0.0  ;;  %v117_v2 = vmov 0.0   ;;  %s40_s14 = int_to_ptr.vmem [resolvable:$true] %s39_s14 }
   0x8   :  { %v54_v3 = vsel %vm27_vm0, 1.0, %v117_v2  ;;  %v55_v4 = vsel %vm28_vm1, 1.0, %v117_v2 }
   0x9   :  { %33 = vst [vmem:[#allocation5] sm:$0xff] %v54_v3 }
   0xa   :  { %34 = vst [vmem:[#allocation5 + $0x8] sm:$0xff] %v55_v4 }
   0xb   :  { %47 = dma.vmem_to_hbm [thread:$0]  %s40_s14, 256, %s42_s17, [#allocation4], %s114_s11, %s114_s11, %s115_s12  }
   0xc   :  { %111 = dma.done.wait [#allocation4], 256  }
   0xd   :  { %112 = vsyncadd [#allocation4], 4294967040 }
   0xe   :  { %52 = vsyncpa [#allocation3], 1 }
   0xf   :  { %53 = vsyncpa [#allocation4], 1 }

</bundles_post_ra>
